<compile_context>
chip_gen: v6e
topology: v6e:2x2x1
jax: 0.10.0
libtpu: 0.0.40
codegen_flags: <defaults>
</compile_context>

<pallas_src>
import functools

import jax
import jax.numpy as jnp
import numpy as np
from jax.experimental import pallas as pl
from jax.experimental.pallas import tpu as pltpu

B_TILE = 128  # lane-dense batch tile


def vae_kernel(x_ref, H_ref, wa_ref, wb_ref, bs_ref, xnew_ref, Hnew_ref, *, input_size):
    I = input_size
    f32 = jnp.float32

    x = x_ref[...]            # (I, Bt)
    H = H_ref[...]            # (I, Bt)
    bs = bs_ref[...]          # (3I + 8, Bt) pre-broadcast bias slab

    # ---- single LSTM step with zero initial state ---------------------------
    # h0 = c0 = 0  =>  hidden-state matmuls vanish, forget gate is dead:
    # c1 = i * g,  S = o * tanh(c1).  One fused (3I, I) @ (I, Bt) matmul;
    # gate biases come from the full-vreg bias slab (no lane broadcasts).
    gates = jnp.dot(wa_ref[0:3 * I, :], x, preferred_element_type=f32) + bs[0:3 * I, :]
    gi = jax.nn.sigmoid(gates[0:I, :])
    gg = jnp.tanh(gates[I:2 * I, :])
    go = jax.nn.sigmoid(gates[2 * I:3 * I, :])
    S = go * jnp.tanh(gi * gg)                                           # (I, Bt)

    # ---- encoder FF on y_j = [S_j ; H_j] (concat replaced by split weights) --
    # 3-unit hidden padded to 8 rows.  Padded bias row 3 is 1.0 so after relu
    # h1 row 3 == 1 exactly -> downstream biases fold into the MXU weights.
    h1 = jnp.maximum(
        jnp.dot(wa_ref[3 * I:3 * I + 8, :], S, preferred_element_type=f32)
        + jnp.dot(wa_ref[3 * I + 8:3 * I + 16, :], H, preferred_element_type=f32)
        + bs[3 * I:3 * I + 8, :], 0.0)                                   # (8, Bt)

    # mu projection: (I, 8) @ (8, Bt) with en_b2 folded into column 3.
    Hnew = jnp.dot(wb_ref[0:I, :], h1, preferred_element_type=f32)       # (I, Bt)

    # ---- decoder, folded to constants at prepare time ------------------------
    # h2 = relu(M @ h1[:3] + v) with M = de_w1 @ W @ en_w2_mu, v = de_w1 @ W @
    # en_b2_mu + de_b1; Mpad[3,3] = 1 keeps the exact "ones" row through relu.
    h2 = jnp.maximum(
        jnp.dot(wb_ref[I:I + 8, :], h1, preferred_element_type=f32), 0.0)  # (8, Bt)
    xnew = jnp.dot(wb_ref[I + 8:2 * I + 8, :], h2, preferred_element_type=f32)  # (I, Bt)

    xnew_ref[...] = xnew
    Hnew_ref[...] = Hnew


def make_params(input_size, batch_size, key):
    I = input_size
    ks = jax.random.split(key, 16)

    def rn(k, shape, scale=0.2):
        return (scale * jax.random.normal(k, shape)).astype(jnp.float32)

    return dict(
        W_ih=rn(ks[0], (4 * I, I)),
        W_hh=rn(ks[1], (4 * I, I)),
        b_ih=rn(ks[2], (4 * I,)),
        b_hh=rn(ks[3], (4 * I,)),
        H=rn(ks[4], (I, batch_size), 1.0),      # np.random.randn in __init__
        W=rn(ks[5], (I, I), 1.0),               # np.random.randn in __init__
        en_w1=rn(ks[6], (3, 2 * I)),
        en_b1=rn(ks[7], (3,)),
        en_w2=rn(ks[8], (2 * I, 3)),
        en_b2=rn(ks[9], (2 * I,)),
        de_w1=rn(ks[10], (3, I)),
        de_b1=rn(ks[11], (3,)),
        de_w2=rn(ks[12], (2 * I, 3)),
        de_b2=rn(ks[13], (2 * I,)),
    )


def prepare_inputs(params, input_size, b_tile=B_TILE):
    """One-time packing / folding of all weights & biases (hoisted off the call path).

    wpack_a (3I+16, I): [W_ih gate rows i,g,o | en_w1[:, :I] pad8 | en_w1[:, I:] pad8]
    wpack_b (2I+8, 8):  [We2 (en mu weights, bias in col 3) |
                         Mpad (folded decoder 3x3 + v, ones-keeper at [3,3]) |
                         Wd2 (de mu weights, bias in col 3)]
    bslab  (3I+8, Bt):  gate biases + padded en_b1 (with 1.0 at row 3I+3),
                        pre-broadcast across the lane (batch) axis.
    """
    I = input_size
    assert I >= 8 and I % 8 == 0, "packing assumes input_size is a multiple of 8"
    p = params
    f32 = jnp.float32

    w_ih = p["W_ih"].astype(f32)
    # gate rows: input (i), cell (g), output (o); forget gate dropped since c0 == 0.
    wg = jnp.concatenate([w_ih[0:I], w_ih[2 * I:3 * I], w_ih[3 * I:4 * I]], axis=0)

    en_w1 = p["en_w1"].astype(f32)                       # (3, 2I)
    w1s = jnp.zeros((8, I), f32).at[:3].set(en_w1[:, :I])
    w1h = jnp.zeros((8, I), f32).at[:3].set(en_w1[:, I:])
    wpack_a = jnp.concatenate([wg, w1s, w1h], axis=0)    # (3I + 16, I)

    en_w2_mu = p["en_w2"][:I, :].astype(f32)             # (I, 3)
    en_b2_mu = p["en_b2"][:I].astype(f32)                # (I,)
    de_w2_mu = p["de_w2"][:I, :].astype(f32)             # (I, 3)
    de_b2_mu = p["de_b2"][:I].astype(f32)                # (I,)

    # mu projection weights with bias folded into column 3 (h1/h2 row 3 == 1).
    We2 = jnp.zeros((I, 8), f32).at[:, :3].set(en_w2_mu).at[:, 3].set(en_b2_mu)
    Wd2 = jnp.zeros((I, 8), f32).at[:, :3].set(de_w2_mu).at[:, 3].set(de_b2_mu)

    # Fold the decoder's dense stages:  de_w1 @ (W @ Hnew) + de_b1
    #   = (de_w1 @ W) @ (en_w2_mu @ h1 + en_b2_mu) + de_b1 = M @ h1 + v.
    A = p["de_w1"].astype(f32) @ p["W"].astype(f32)      # (3, I)
    M = A @ en_w2_mu                                     # (3, 3)
    v = A @ en_b2_mu + p["de_b1"].astype(f32)            # (3,)
    Mpad = (jnp.zeros((8, 8), f32)
            .at[:3, :3].set(M)
            .at[:3, 3].set(v)
            .at[3, 3].set(1.0))                          # keep ones row through relu

    wpack_b = jnp.concatenate([We2, Mpad, Wd2], axis=0)  # (2I + 8, 8)

    # Pre-broadcast bias slab (full-vreg VPU adds in the kernel, no lane bcasts).
    b = (p["b_ih"] + p["b_hh"]).astype(f32)
    gate_b = jnp.concatenate([b[0:I], b[2 * I:3 * I], b[3 * I:4 * I]])   # (3I,)
    b1 = jnp.zeros((8,), f32).at[:3].set(p["en_b1"].astype(f32)).at[3].set(1.0)
    bvec = jnp.concatenate([gate_b, b1])                                  # (3I + 8,)
    bslab = jnp.broadcast_to(bvec[:, None], (3 * I + 8, b_tile)).astype(f32)

    return wpack_a, wpack_b, bslab


def vae_forward(x, H, wpack_a, wpack_b, bslab, input_size, batch_size, b_tile=B_TILE):
    """x, H: (input_size, batch_size), column-major (native module layout).
    Batch is padded to a multiple of b_tile (=128 lanes) so every vreg/store is
    lane-dense; a 'parallel' batch grid lets v7x split tiles across TensorCores.
    Returns (x_new, H_new), each (input_size, batch_size)."""
    I, B = input_size, batch_size
    f32 = jnp.float32
    Bp = ((B + b_tile - 1) // b_tile) * b_tile
    if Bp != B:
        x = jnp.pad(x, ((0, 0), (0, Bp - B)))
        H = jnp.pad(H, ((0, 0), (0, Bp - B)))
    n_tiles = Bp // b_tile

    io_spec = pl.BlockSpec((I, b_tile), lambda j: (0, j))
    resident = lambda shape: pl.BlockSpec(shape, lambda j: (0, 0))

    x_new, H_new = pl.pallas_call(
        functools.partial(vae_kernel, input_size=I),
        out_shape=(jax.ShapeDtypeStruct((I, Bp), f32),
                   jax.ShapeDtypeStruct((I, Bp), f32)),
        grid_spec=pltpu.PrefetchScalarGridSpec(
            num_scalar_prefetch=0,
            grid=(n_tiles,),
            in_specs=[
                io_spec,                                   # x tile
                io_spec,                                   # H tile
                resident((3 * I + 16, I)),                 # wpack_a (stays resident)
                resident((2 * I + 8, 8)),                  # wpack_b (stays resident)
                resident((3 * I + 8, b_tile)),             # bias slab (stays resident)
            ],
            out_specs=[io_spec, io_spec],
        ),
        compiler_params=pltpu.CompilerParams(
            dimension_semantics=("parallel",)),
    )(x, H, wpack_a, wpack_b, bslab)

    if Bp != B:
        x_new = x_new[:, :B]
        H_new = H_new[:, :B]
    return x_new, H_new


def vae_forward_ref(x, params, input_size, batch_size):
    """Pure-JAX reference mirroring the PyTorch forward (eval mode)."""
    I, B = input_size, batch_size
    p = params
    xT = x.T
    h0 = jnp.zeros((B, I), jnp.float32)
    c0 = jnp.zeros((B, I), jnp.float32)
    gates = xT @ p["W_ih"].T + h0 @ p["W_hh"].T + p["b_ih"] + p["b_hh"]
    gi, gf, gg, go = (gates[:, g * I:(g + 1) * I] for g in range(4))
    gi, gf, go = jax.nn.sigmoid(gi), jax.nn.sigmoid(gf), jax.nn.sigmoid(go)
    gg = jnp.tanh(gg)
    c1 = gf * c0 + gi * gg
    S = go * jnp.tanh(c1)                              # (B, I)
    y = jnp.concatenate([S, p["H"].T], axis=1)         # (B, 2I)
    out = jnp.maximum(y @ p["en_w1"].T + p["en_b1"], 0.0) @ p["en_w2"].T + p["en_b2"]
    Hnew = out[:, :I]                                  # eval-mode reparam -> mu
    Wh = Hnew @ p["W"].T
    out2 = jnp.maximum(Wh @ p["de_w1"].T + p["de_b1"], 0.0) @ p["de_w2"].T + p["de_b2"]
    xnew = out2[:, :I]
    return xnew.T, Hnew.T


if __name__ == "__main__":
    key = jax.random.PRNGKey(0)

    # Two cases: the module's tiny batch (padded to one lane-dense 128 tile) and a
    # lane-dense multi-tile batch that exercises the parallel batch grid (2 tiles).
    for INPUT_SIZE, BATCH_SIZE in [(16, 8), (16, 256)]:
        key, pkey, xkey = jax.random.split(key, 3)
        params = make_params(INPUT_SIZE, BATCH_SIZE, pkey)
        x = jax.random.normal(xkey, (INPUT_SIZE, BATCH_SIZE), jnp.float32)

        # One-time parameter packing / decoder folding (off the per-call path).
        wpack_a, wpack_b, bslab = prepare_inputs(params, INPUT_SIZE)

        x_new, H_new = vae_forward(x, params["H"], wpack_a, wpack_b, bslab,
                                   INPUT_SIZE, BATCH_SIZE)
        jax.block_until_ready((x_new, H_new))

        x_ref, H_ref = vae_forward_ref(x, params, INPUT_SIZE, BATCH_SIZE)
        np.testing.assert_allclose(np.asarray(x_new), np.asarray(x_ref),
                                   rtol=1e-4, atol=1e-4)
        np.testing.assert_allclose(np.asarray(H_new), np.asarray(H_ref),
                                   rtol=1e-4, atol=1e-4)
        assert x_new.shape == (INPUT_SIZE, BATCH_SIZE)
        assert H_new.shape == (INPUT_SIZE, BATCH_SIZE)

    print("KERNEL_OK")
</pallas_src>

<mosaic_0001>
module attributes {stable_mosaic.version = 11 : i64} {
  func.func @vae_kernel(%arg0: i32, %arg1: memref<16x128xf32, #tpu.memory_space<vmem>>, %arg2: memref<16x128xf32, #tpu.memory_space<vmem>>, %arg3: memref<64x16xf32, #tpu.memory_space<vmem>>, %arg4: memref<40x8xf32, #tpu.memory_space<vmem>>, %arg5: memref<56x128xf32, #tpu.memory_space<vmem>>, %arg6: memref<16x128xf32, #tpu.memory_space<vmem>>, %arg7: memref<16x128xf32, #tpu.memory_space<vmem>>) attributes {dimension_semantics = [#tpu.dimension_semantics<parallel>], iteration_bounds = array<i64: 1>, scalar_prefetch = 0 : i64, scratch_operands = 0 : i64, tpu.core_type = #tpu.core_type<tc>, window_params = [{transform_indices = @transform_0, window_bounds = array<i64: 16, 128>}, {transform_indices = @transform_1, window_bounds = array<i64: 16, 128>}, {pipeline_mode = #tpu.pipeline_mode<synchronous>, transform_indices = @transform_2, window_bounds = array<i64: 64, 16>}, {pipeline_mode = #tpu.pipeline_mode<synchronous>, transform_indices = @transform_3, window_bounds = array<i64: 40, 8>}, {pipeline_mode = #tpu.pipeline_mode<synchronous>, transform_indices = @transform_4, window_bounds = array<i64: 56, 128>}, {transform_indices = @transform_5, window_bounds = array<i64: 16, 128>}, {transform_indices = @transform_6, window_bounds = array<i64: 16, 128>}]} {
    %c0 = arith.constant 0 : index
    %c0_0 = arith.constant 0 : index
    %0 = vector.load %arg1[%c0, %c0_0] : memref<16x128xf32, #tpu.memory_space<vmem>>, vector<16x128xf32>
    %c0_1 = arith.constant 0 : index
    %c0_2 = arith.constant 0 : index
    %1 = vector.load %arg2[%c0_1, %c0_2] : memref<16x128xf32, #tpu.memory_space<vmem>>, vector<16x128xf32>
    %c0_3 = arith.constant 0 : index
    %c0_4 = arith.constant 0 : index
    %2 = vector.load %arg5[%c0_3, %c0_4] : memref<56x128xf32, #tpu.memory_space<vmem>>, vector<56x128xf32>
    %c0_5 = arith.constant 0 : index
    %c0_6 = arith.constant 0 : index
    %3 = vector.load %arg3[%c0_5, %c0_6] : memref<64x16xf32, #tpu.memory_space<vmem>>, vector<48x16xf32>
    %cst = arith.constant dense<0.000000e+00> : vector<48x128xf32>
    %4 = tpu.matmul %3, %0, %cst {dimension_numbers = #tpu.dot_dimension_numbers<[1], [0], [0], [1], [0, 0, 1, 1], [], []>} : vector<48x16xf32>, vector<16x128xf32>, vector<48x128xf32> -> vector<48x128xf32>
    %5 = vector.extract_strided_slice %2 {offsets = [0, 0], sizes = [48, 128], strides = [1, 1]} : vector<56x128xf32> to vector<48x128xf32>
    %6 = arith.addf %4, %5 : vector<48x128xf32>
    %7 = vector.extract_strided_slice %6 {offsets = [0, 0], sizes = [16, 128], strides = [1, 1]} : vector<48x128xf32> to vector<16x128xf32>
    %8 = arith.negf %7 : vector<16x128xf32>
    %9 = math.exp %8 : vector<16x128xf32>
    %cst_7 = arith.constant 1.000000e+00 : f32
    %10 = vector.broadcast %cst_7 : f32 to vector<16x128xf32>
    %11 = arith.addf %10, %9 : vector<16x128xf32>
    %12 = arith.divf %10, %11 : vector<16x128xf32>
    %13 = vector.extract_strided_slice %6 {offsets = [16, 0], sizes = [16, 128], strides = [1, 1]} : vector<48x128xf32> to vector<16x128xf32>
    %14 = math.tanh %13 : vector<16x128xf32>
    %15 = vector.extract_strided_slice %6 {offsets = [32, 0], sizes = [16, 128], strides = [1, 1]} : vector<48x128xf32> to vector<16x128xf32>
    %16 = arith.negf %15 : vector<16x128xf32>
    %17 = math.exp %16 : vector<16x128xf32>
    %cst_8 = arith.constant 1.000000e+00 : f32
    %18 = vector.broadcast %cst_8 : f32 to vector<16x128xf32>
    %19 = arith.addf %18, %17 : vector<16x128xf32>
    %20 = arith.divf %18, %19 : vector<16x128xf32>
    %21 = arith.mulf %12, %14 : vector<16x128xf32>
    %22 = math.tanh %21 : vector<16x128xf32>
    %23 = arith.mulf %20, %22 : vector<16x128xf32>
    %c48 = arith.constant 48 : index
    %c0_9 = arith.constant 0 : index
    %24 = vector.load %arg3[%c48, %c0_9] : memref<64x16xf32, #tpu.memory_space<vmem>>, vector<8x16xf32>
    %cst_10 = arith.constant dense<0.000000e+00> : vector<8x128xf32>
    %25 = tpu.matmul %24, %23, %cst_10 {dimension_numbers = #tpu.dot_dimension_numbers<[1], [0], [0], [1], [0, 0, 1, 1], [], []>} : vector<8x16xf32>, vector<16x128xf32>, vector<8x128xf32> -> vector<8x128xf32>
    %c56 = arith.constant 56 : index
    %c0_11 = arith.constant 0 : index
    %26 = vector.load %arg3[%c56, %c0_11] : memref<64x16xf32, #tpu.memory_space<vmem>>, vector<8x16xf32>
    %cst_12 = arith.constant dense<0.000000e+00> : vector<8x128xf32>
    %27 = tpu.matmul %26, %1, %cst_12 {dimension_numbers = #tpu.dot_dimension_numbers<[1], [0], [0], [1], [0, 0, 1, 1], [], []>} : vector<8x16xf32>, vector<16x128xf32>, vector<8x128xf32> -> vector<8x128xf32>
    %28 = arith.addf %25, %27 : vector<8x128xf32>
    %29 = vector.extract_strided_slice %2 {offsets = [48, 0], sizes = [8, 128], strides = [1, 1]} : vector<56x128xf32> to vector<8x128xf32>
    %30 = arith.addf %28, %29 : vector<8x128xf32>
    %cst_13 = arith.constant 0.000000e+00 : f32
    %31 = vector.broadcast %cst_13 : f32 to vector<8x128xf32>
    %32 = arith.maximumf %30, %31 : vector<8x128xf32>
    %c0_14 = arith.constant 0 : index
    %c0_15 = arith.constant 0 : index
    %33 = vector.load %arg4[%c0_14, %c0_15] : memref<40x8xf32, #tpu.memory_space<vmem>>, vector<16x8xf32>
    %cst_16 = arith.constant dense<0.000000e+00> : vector<16x128xf32>
    %34 = tpu.matmul %33, %32, %cst_16 {dimension_numbers = #tpu.dot_dimension_numbers<[1], [0], [0], [1], [0, 0, 1, 1], [], []>} : vector<16x8xf32>, vector<8x128xf32>, vector<16x128xf32> -> vector<16x128xf32>
    %c16 = arith.constant 16 : index
    %c0_17 = arith.constant 0 : index
    %35 = vector.load %arg4[%c16, %c0_17] : memref<40x8xf32, #tpu.memory_space<vmem>>, vector<8x8xf32>
    %cst_18 = arith.constant dense<0.000000e+00> : vector<8x128xf32>
    %36 = tpu.matmul %35, %32, %cst_18 {dimension_numbers = #tpu.dot_dimension_numbers<[1], [0], [0], [1], [0, 0, 1, 1], [], []>} : vector<8x8xf32>, vector<8x128xf32>, vector<8x128xf32> -> vector<8x128xf32>
    %cst_19 = arith.constant 0.000000e+00 : f32
    %37 = vector.broadcast %cst_19 : f32 to vector<8x128xf32>
    %38 = arith.maximumf %36, %37 : vector<8x128xf32>
    %c24 = arith.constant 24 : index
    %c0_20 = arith.constant 0 : index
    %39 = vector.load %arg4[%c24, %c0_20] : memref<40x8xf32, #tpu.memory_space<vmem>>, vector<16x8xf32>
    %cst_21 = arith.constant dense<0.000000e+00> : vector<16x128xf32>
    %40 = tpu.matmul %39, %38, %cst_21 {dimension_numbers = #tpu.dot_dimension_numbers<[1], [0], [0], [1], [0, 0, 1, 1], [], []>} : vector<16x8xf32>, vector<8x128xf32>, vector<16x128xf32> -> vector<16x128xf32>
    %c0_22 = arith.constant 0 : index
    %c0_23 = arith.constant 0 : index
    %41 = vector.load %arg6[%c0_22, %c0_23] : memref<16x128xf32, #tpu.memory_space<vmem>>, vector<16x128xf32>
    tpu.vector_store %arg6[%c0_22, %c0_23], %40 {strides = array<i32>} : memref<16x128xf32, #tpu.memory_space<vmem>>, vector<16x128xf32>,
    %c0_24 = arith.constant 0 : index
    %c0_25 = arith.constant 0 : index
    %42 = vector.load %arg7[%c0_24, %c0_25] : memref<16x128xf32, #tpu.memory_space<vmem>>, vector<16x128xf32>
    tpu.vector_store %arg7[%c0_24, %c0_25], %34 {strides = array<i32>} : memref<16x128xf32, #tpu.memory_space<vmem>>, vector<16x128xf32>,
    return
  }
  func.func @transform_0(%arg0: i32) -> (i32, i32) {
    %c0_i32 = arith.constant 0 : i32
    %c0_i32_0 = arith.constant 0 : i32
    return %c0_i32, %arg0 : i32, i32
  }
  func.func @transform_1(%arg0: i32) -> (i32, i32) {
    %c0_i32 = arith.constant 0 : i32
    %c0_i32_0 = arith.constant 0 : i32
    return %c0_i32, %arg0 : i32, i32
  }
  func.func @transform_2(%arg0: i32) -> (i32, i32) {
    %c0_i32 = arith.constant 0 : i32
    %c0_i32_0 = arith.constant 0 : i32
    %c0_i32_1 = arith.constant 0 : i32
    return %c0_i32, %c0_i32_0 : i32, i32
  }
  func.func @transform_3(%arg0: i32) -> (i32, i32) {
    %c0_i32 = arith.constant 0 : i32
    %c0_i32_0 = arith.constant 0 : i32
    %c0_i32_1 = arith.constant 0 : i32
    return %c0_i32, %c0_i32_0 : i32, i32
  }
  func.func @transform_4(%arg0: i32) -> (i32, i32) {
    %c0_i32 = arith.constant 0 : i32
    %c0_i32_0 = arith.constant 0 : i32
    %c0_i32_1 = arith.constant 0 : i32
    return %c0_i32, %c0_i32_0 : i32, i32
  }
  func.func @transform_5(%arg0: i32) -> (i32, i32) {
    %c0_i32 = arith.constant 0 : i32
    %c0_i32_0 = arith.constant 0 : i32
    return %c0_i32, %arg0 : i32, i32
  }
  func.func @transform_6(%arg0: i32) -> (i32, i32) {
    %c0_i32 = arith.constant 0 : i32
    %c0_i32_0 = arith.constant 0 : i32
    return %c0_i32, %arg0 : i32, i32
  }
}

</mosaic_0001>

<bundles_post_ra>
// kernel: tpu_custom_call.1
= control target key start
LH: loop header
LB: loop body
LE: loop exit
PB: predicated region body
PF: predicated region fallthrough
CT: control target
= control target key end

     0   :  { %12 = vsyncpa [#allocation3], 0  ;;  %vm41_vm0 = vcmask 130048   ;;  %s910_s0 = inlined_call_operand.vmem [shape: f32[16,128], index: 0, kind: input, shape index: {}]   ;;  %s911_s1 = inlined_call_operand.vmem [shape: f32[16,128], index: 1, kind: input, shape index: {}]   ;;  %s912_s2 = inlined_call_operand.vmem [shape: f32[64,16], index: 2, kind: input, shape index: {}]   ;;  %s913_s3 = inlined_call_operand.vmem [shape: f32[40,8], index: 3, kind: input, shape index: {}]   ;;  %s914_s4 = inlined_call_operand.vmem [shape: f32[56,128], index: 4, kind: input, shape index: {}]   ;;  %s915_s5 = inlined_call_operand.hbm [shape: f32[16,128], index: 5, kind: output, shape index: {0}]   ;;  %s916_s6 = inlined_call_operand.hbm [shape: f32[16,128], index: 6, kind: output, shape index: {1}]  }
   0x1   :  { %v25_v0 = vld [vmem:[%s910_s0 + $0x8] sm:$0xff]  ;;  %v24_v1 = vld [vmem:[%s910_s0] sm:$0xff]  ;;  %v37_v4 = vld [vmem:[%s912_s2 + $0x10] sm:$0xff] }
   0x2   :  { %v35_v2 = vld [vmem:[%s912_s2] sm:$0xff]  ;;  %654 = vmatprep.subr.mxu0 %v25_v0  ;;  %v36_v3 = vld [vmem:[%s912_s2 + $0x8] sm:$0xff] }
   0x3   :  { %658 = vmatprep.mubr.msk.f32.mxu0 %vm41_vm0, %v35_v2  ;;  %655 = vmatpush3.msra.mxu0 %v25_v0 }
   0x4   :  { %656 = vmatprep.subr.mxu0 %v24_v1 }
   0x5   :  { %13 = vsyncpa [#allocation5], 0  ;;  %657 = vmatpush3.msra.mxu0 %v24_v1  ;;  %v38_v5 = vld [vmem:[%s912_s2 + $0x18] sm:$0xff]  ;;  %v39_v6 = vld [vmem:[%s912_s2 + $0x20] sm:$0xff]  ;;  %v770_v9 = vmov 0.0   ;;  %vm771_vm1 = vmmov 0  }
   0x6   :  { %659 = vmatmul.mubr.msk.f32.vlgmr.msra.gmra.mxu0 %vm41_vm0, %v36_v3  ;;  %v40_v7 = vld [vmem:[%s912_s2 + $0x28] sm:$0xff]  ;;  %667 = vmatprep.subr.mxu1 %v770_v9  ;;  %v26_v10 = vld [vmem:[%s911_s1] sm:$0xff]  ;;  %v188_v11 = vld [vmem:[%s912_s2 + $0x38] sm:$0xff]  ;;  %vm339_vm2 = vcmask 64512   ;;  %s772_s16 = smov [#allocation4]  }
   0x7   :  { %661 = vmatprep.mubr.msk.f32.mxu0 %vm41_vm0, %v37_v4  ;;  %v27_v8 = vld [vmem:[%s911_s1 + $0x8] sm:$0xff]  ;;  %671 = vmatprep.mubr.msk.f32.mxu1 %vm771_vm1, %v770_v9  ;;  %v28_v14 = vld [vmem:[%s914_s4] sm:$0xff]  ;;  %v31_v29 = vld [vmem:[%s914_s4 + $0x18] sm:$0xff]  ;;  %s600_s17 = sshll.u32 %s772_s16, 4  ;;  %s601_s17 = int_to_ptr.vmem [resolvable:$true] %s600_s17 }
   0x8   :  { %668 = vmatpush3.msra.mxu1 %v27_v8  ;;  %686 = vmatprep.subr.mxu0 %v770_v9  ;;  %v29_v12 = vld [vmem:[%s914_s4 + $0x8] sm:$0xff]  ;;  %v32_v24 = vld [vmem:[%s914_s4 + $0x20] sm:$0xff]  ;;  %v30_v31 = vld [vmem:[%s914_s4 + $0x10] sm:$0xff]  ;;  %s726_s1 = scalar_lea.vmem %s601_s17, 256  ;;  %p731_p1 = scmp.lt.s32.totalorder %s601_s17, %s601_s17 }
   0x9   :  { %669 = vmatprep.subr.mxu1 %v770_v9  ;;  %v33_v22 = vld [vmem:[%s914_s4 + $0x28] sm:$0xff]  ;;  %v187_v54 = vld [vmem:[%s912_s2 + $0x30] sm:$0xff]  ;;  %v337_v0 = vld [vmem:[%s913_s3] sm:$0xff]  ;;  %p727_p0 = scmp.ne.s32.totalorder %s601_s17, %s726_s1  ;;  %p732_p2 = scmp.lt.s32.totalorder %s726_s1, %s726_s1 }
   0xa   :  { %662 = vmatmul.mubr.msk.f32.gmra.mxu0 %vm41_vm0, %v38_v5  ;;  %670 = vmatpush3.msra.mxu1 %v26_v10  ;;  %v34_v57 = vld [vmem:[%s914_s4 + $0x30] sm:$0xff]  ;;  %v338_v1 = vld [vmem:[%s913_s3 + $0x8] sm:$0xff]  ;;  %v496_v2 = vld [vmem:[%s913_s3 + $0x18] sm:$0xff] }
   0xb   :  { %664 = vmatprep.mubr.msk.f32.mxu0 %vm41_vm0, %v39_v6  ;;  %672 = vmatmul.mubr.msk.f32.vlgmr.msra.gmra.mxu1 %vm41_vm0, %v188_v11  ;;  %v421_v63 = vld [vmem:[%s913_s3 + $0x10] sm:$0xff]  ;;  %v497_v6 = vld [vmem:[%s913_s3 + $0x20] sm:$0xff]  ;;  %p733_p3 = por %p732_p2, %p731_p1 }
   0xc   :  { %674 = vmatprep.subr.mxu1 %v770_v9  ;;  %678 = vmatprep.mubr.msk.f32.mxu1 %vm771_vm1, %v770_v9 }
   0xd   :  { %p734_p4 = pnand %p733_p3, %p727_p0 }
   0xe   :  { %665 = vmatmul.mubr.msk.f32.gmra.mxu0 %vm41_vm0, %v40_v7 }
   0xf   :  { %688 = vmatprep.mubr.msk.f32.mxu0 %vm771_vm1, %v770_v9 }
  0xc6   :  { %v660_v13 = vpop.f32.mrf.mxu0 }
  0xc7   :  { %v132_v15 = vadd.f32 %v660_v13, %v29_v12 }
  0xc8   :  { %v126_v16 = vpop.f32.mrf.mxu0 }
  0xc9   :  { %v622_v17 = vmul.f32 -1.442695, %v132_v15  ;;  %v127_v18 = vadd.f32 %v126_v16, %v28_v14 }
  0xca   :  { %v663_v19 = vpop.f32.mrf.mxu0 }
  0xcb   :  { %702 = vpow2.f32 %v622_v17  ;;  %v621_v20 = vmul.f32 -1.442695, %v127_v18  ;;  %v142_v32 = vadd.f32 %v663_v19, %v31_v29  ;;  %v258_v55 = vpop.f32.mrf.mxu1 }
  0xcc   :  { %v136_v21 = vpop.f32.mrf.mxu0 }
  0xcd   :  { %704 = vpow2.f32 %v621_v20  ;;  %v137_v34 = vadd.f32 %v136_v21, %v30_v31  ;;  %v673_v56 = vpop.f32.mrf.mxu1 }
  0xce   :  { %v666_v23 = vpop.f32.mrf.mxu0 }
  0xcf   :  { %v152_v25 = vadd.f32 %v666_v23, %v33_v22 }
  0xd0   :  { %v146_v26 = vpop.f32.mrf.mxu0 }
  0xd1   :  { %v624_v27 = vmul.f32 -1.442695, %v152_v25  ;;  %v147_v28 = vadd.f32 %v146_v26, %v32_v24 }
  0xd3   :  { %v623_v30 = vmul.f32 -1.442695, %v147_v28  ;;  %706 = vpow2.f32 %v624_v27 }
  0xd5   :  { %708 = vpow2.f32 %v623_v30 }
  0xd6   :  { %710 = vtanh.f32 %v142_v32 }
  0xd8   :  { %v703_v33 = vpop.eup %702 }
  0xd9   :  { %v162_v35 = vadd.f32 1.0, %v703_v33 }
  0xda   :  { %v705_v36 = vpop.eup %704 }
  0xdb   :  { %712 = vrcp.f32 %v162_v35  ;;  %v161_v37 = vadd.f32 1.0, %v705_v36 }
  0xdc   :  { %714 = vtanh.f32 %v137_v34 }
  0xdd   :  { %716 = vrcp.f32 %v161_v37 }
  0xe0   :  { %v707_v38 = vpop.eup %706 }
  0xe1   :  { %v176_v40 = vadd.f32 1.0, %v707_v38 }
  0xe2   :  { %v709_v39 = vpop.eup %708 }
  0xe3   :  { %v711_v41 = vpop.eup %710  ;;  %v175_v43 = vadd.f32 1.0, %v709_v39  ;;  %718 = vrcp.f32 %v176_v40 }
  0xe8   :  { %v713_v42 = vpop.eup %712 }
  0xe9   :  { %v715_v44 = vpop.eup %714  ;;  %v182_v45 = vmul.f32 %v713_v42, %v711_v41 }
  0xea   :  { %v717_v46 = vpop.eup %716 }
  0xeb   :  { %720 = vtanh.f32 %v182_v45  ;;  %v181_v47 = vmul.f32 %v717_v46, %v715_v44 }
  0xec   :  { %722 = vrcp.f32 %v175_v43 }
  0xed   :  { %724 = vtanh.f32 %v181_v47 }
  0xf0   :  { %v719_v48 = vpop.eup %718 }
  0xf8   :  { %v721_v49 = vpop.eup %720 }
  0xf9   :  { %v723_v50 = vpop.eup %722  ;;  %v186_v51 = vmul.f32 %v721_v49, %v719_v48 }
  0xfa   :  { %v725_v52 = vpop.eup %724 }
  0xfb   :  { %675 = vmatpush3.msra.mxu1 %v186_v51  ;;  %v185_v53 = vmul.f32 %v725_v52, %v723_v50 }
  0xfc   :  { %676 = vmatprep.subr.mxu1 %v770_v9 }
  0xfd   :  { %677 = vmatpush3.msra.mxu1 %v185_v53 }
  0xfe   :  { %679 = vmatmul.mubr.msk.f32.vlgmr.msra.gmra.mxu1 %vm41_vm0, %v187_v54 }
  0xff   :  { %683 = vmatprep.mubr.msk.f32.mxu1 %vm339_vm2, %v337_v0 }
 0x1be   :  { %v331_v58 = vpop.f32.mrf.mxu1 }
 0x1bf   :  { %v332_v59 = vadd.f32 %v331_v58, %v258_v55 }
 0x1c0   :  { %v680_v60 = vpop.f32.mrf.mxu1 }
 0x1c1   :  { %v335_v61 = vadd.f32 %v332_v59, %v34_v57 }
 0x1c3   :  { %v336_v62 = vmax.f32 %v335_v61, 0.0 }
 0x1c5   :  { %681 = vmatprep.subr.mxu1 %v336_v62  ;;  %687 = vmatpush3.msra.mxu0 %v336_v62 }
 0x1c6   :  { %682 = vmatpush3.msra.mxu1 %v336_v62  ;;  %689 = vmatmul.mubr.msk.f32.vlgmr.msra.gmra.mxu0 %vm339_vm2, %v421_v63 }
 0x1c7   :  { %684 = vmatmul.mubr.msk.f32.vlgmr.msra.gmra.mxu1 %vm339_vm2, %v338_v1 }
 0x1c8   :  { %693 = vmatprep.mubr.msk.f32.mxu1 %vm339_vm2, %v496_v2 }
 0x286   :  { %v491_v3 = vpop.f32.mrf.mxu0 }
 0x287   :  { %v495_v4 = vmax.f32 %v491_v3, 0.0  ;;  %v685_v7 = vpop.f32.mrf.mxu1 }
 0x288   :  { %v690_v5 = vpop.f32.mrf.mxu0  ;;  %582 = vst [vmem:[#allocation4 + $0x8] sm:$0xff] %v685_v7 }
 0x289   :  { %691 = vmatprep.subr.mxu1 %v495_v4  ;;  %v412_v8 = vpop.f32.mrf.mxu1 }
 0x28a   :  { %692 = vmatpush3.msra.mxu1 %v495_v4  ;;  %581 = vst [vmem:[#allocation4] sm:$0xff] %v412_v8 }
 0x28b   :  { %694 = vmatmul.mubr.msk.f32.vlgmr.msra.gmra.mxu1 %vm339_vm2, %v497_v6 }
 0x28c   :  { %737 = shalt.err (!%p734_p4)
}
 0x28d   :  { %s773_s18 = smov 128   ;;  %s774_s3 = smov 8  }
 0x28e   :  { %606 = dma.vmem_to_hbm [thread:$0]  %s601_s17, 256, %s916_s6, [#allocation5], %s773_s18, %s773_s18, %s774_s3  }
 0x28f   :  { %s775_s21 = smov [#allocation2]  }
 0x290   :  { %s588_s22 = sshll.u32 %s775_s21, 4  ;;  %s589_s22 = int_to_ptr.vmem [resolvable:$true] %s588_s22 }
 0x291   :  { %s746_s23 = scalar_lea.vmem %s589_s22, 256  ;;  %p751_p6 = scmp.lt.s32.totalorder %s589_s22, %s589_s22 }
 0x292   :  { %p747_p5 = scmp.ne.s32.totalorder %s589_s22, %s746_s23  ;;  %p752_p7 = scmp.lt.s32.totalorder %s746_s23, %s746_s23 }
 0x294   :  { %p753_p8 = por %p752_p7, %p751_p6 }
 0x296   :  { %p754_p9 = pnand %p753_p8, %p747_p5 }
 0x34b   :  { %v695_v9 = vpop.f32.mrf.mxu1 }
 0x34c   :  { %580 = vst [vmem:[#allocation2 + $0x8] sm:$0xff] %v695_v9 }
 0x34d   :  { %v570_v10 = vpop.f32.mrf.mxu1 }
 0x34e   :  { %579 = vst [vmem:[#allocation2] sm:$0xff] %v570_v10 }
 0x34f   :  { %757 = shalt.err (!%p754_p9)
}
 0x350   :  { %594 = dma.vmem_to_hbm [thread:$0]  %s589_s22, 256, %s915_s5, [#allocation3], %s773_s18, %s773_s18, %s774_s3  }
 0x351   :  { %766 = dma.done.wait [#allocation3], 256  }
 0x352   :  { %767 = vsyncadd [#allocation3], 4294967040 }
 0x353   :  { %768 = dma.done.wait [#allocation5], 256  }
 0x354   :  { %769 = vsyncadd [#allocation5], 4294967040 }
 0x355   :  { %613 = vsyncpa [#allocation3], 1 }
 0x356   :  { %614 = vsyncpa [#allocation5], 1 }

</bundles_post_ra>
